<compile_context>
chip_gen: v5e
topology: v5e:2x2
jax: 0.10.0
libtpu: 0.0.40
codegen_flags: <defaults>
</compile_context>

<pallas_src>
from functools import partial

import jax
import jax.numpy as jnp
from jax.experimental import pallas as pl
from jax.experimental.pallas import tpu as pltpu


def focal_loss_kernel(logits_ref, target_ref, weight_ref, out_ref, *, gamma):
    x = logits_ref[...]                      # [C_pad, TN] f32  (classes x rows)
    c, tn = x.shape
    t = target_ref[...]                      # [1, TN] int32  (-1 in padded rows)
    w = weight_ref[...]                      # [C_pad, 1] f32 (0 in padded classes)

    # Numerically stable softmax statistics over the class (sublane) axis.
    m = jnp.max(x, axis=0, keepdims=True)    # [1, TN]
    e = jnp.exp(x - m)                       # [C_pad, TN]  -- the only O(N*C) EUP work
    s = jnp.sum(e, axis=0, keepdims=True)    # [1, TN]

    # One-hot of the target class; gather the per-row quantities to [1, TN]
    # *before* doing the focal / weight math (cuts pow + 2 multiplies by ~C x).
    cls = jax.lax.broadcasted_iota(jnp.int32, (c, tn), 0)
    mask = cls == t                                                    # [C_pad, TN]
    x_t = jnp.sum(jnp.where(mask, x, 0.0), axis=0, keepdims=True)      # logit[target]
    e_t = jnp.sum(jnp.where(mask, e, 0.0), axis=0, keepdims=True)      # exp(logit-m)[target]
    w_t = jnp.sum(jnp.where(mask, w, 0.0), axis=0, keepdims=True)      # weight[target]

    p_t = e_t / s                            # softmax prob of the target class
    logp_t = (x_t - m) - jnp.log(s)          # log-softmax of the target class

    g = float(gamma)
    if g == 0.0:
        # (1 - p)**0 == 1 exactly (matches torch's 0**0 == 1 behavior).
        focal = jnp.ones_like(p_t)
    else:
        q = jnp.maximum(1.0 - p_t, 0.0)      # guard rounding noise below 0
        gi = int(g)
        if float(gi) == g and 0 < gi <= 32:
            focal = q                        # integer power: repeated multiply (VALU)
            for _ in range(gi - 1):
                focal = focal * q
        else:
            focal = q ** g                   # non-integer power: EUP, but only [1, TN]

    # Per-row focal loss; padded rows have w_t == 0 and contribute exactly 0.
    fl_t = w_t * (-focal) * logp_t           # [1, TN]
    out_ref[...] = jnp.broadcast_to(fl_t, (8, tn))


def _round_up(v, m):
    return ((v + m - 1) // m) * m


def focal_loss(logits, target, weight, gamma=0.0, block_rows=1024):
    n, c = logits.shape
    c_pad = max(8, _round_up(c, 8))                         # sublane multiple

    # Row tile: multiple of 128 lanes, sized against a conservative VMEM
    # budget (double-buffered inputs + output <= ~16 MiB fits v5e/v6e/v7x).
    tn = min(_round_up(block_rows, 128), _round_up(max(n, 1), 128))

    def _footprint(t):
        per_step = (c_pad * t + t + 8 * t) * 4 + c_pad * 4  # logits + target + out + weight
        return 2 * per_step                                 # double buffering

    while tn > 128 and _footprint(tn) > 16 * 1024 * 1024:
        tn -= 128
    n_pad = _round_up(max(n, 1), tn)
    num_tiles = n_pad // tn

    # Padding: a big finite negative vanishes from the softmax sum (exp -> 0)
    # without producing inf/NaN; padded rows get target = -1 and weight = 0 so
    # they contribute exactly 0 to the loss.
    neg_big = jnp.float32(-1e9)
    logits_t = jnp.full((c_pad, n_pad), neg_big, dtype=jnp.float32)
    logits_t = logits_t.at[:c, :n].set(logits.astype(jnp.float32).T)
    target2d = jnp.full((1, n_pad), -1, dtype=jnp.int32)
    target2d = target2d.at[0, :n].set(target.astype(jnp.int32))
    weight2d = jnp.zeros((c_pad, 1), dtype=jnp.float32)
    weight2d = weight2d.at[:c, 0].set(weight.astype(jnp.float32))

    out = pl.pallas_call(
        partial(focal_loss_kernel, gamma=float(gamma)),
        out_shape=jax.ShapeDtypeStruct((8, n_pad), jnp.float32),
        grid=(num_tiles,),
        in_specs=[
            pl.BlockSpec((c_pad, tn), lambda i: (0, i)),    # logits  (classes x rows)
            pl.BlockSpec((1, tn), lambda i: (0, i)),        # target
            pl.BlockSpec((c_pad, 1), lambda i: (0, 0)),     # per-class weight
        ],
        out_specs=pl.BlockSpec((8, tn), lambda i: (0, i)),  # lane-dense per-row losses
        compiler_params=pltpu.CompilerParams(
            dimension_semantics=("parallel",),              # no cross-step state -> megacore OK
            vmem_limit_bytes=32 * 1024 * 1024,
        ),
    )(logits_t, target2d, weight2d)

    # Per-row losses live in sublane 0; padded rows are exactly 0.  The final
    # scalar reduction over N floats is left to XLA (trivial vs. the kernel).
    return jnp.sum(out[0, :n])


def focal_loss_ref(logits, target, weight, gamma=0.0):
    sm = jax.nn.softmax(logits.astype(jnp.float32), axis=1)
    focal = jnp.ones_like(sm) if gamma == 0.0 else (1.0 - sm) ** gamma
    fl = weight[None, :] * (-focal) * jnp.log(sm)
    return jnp.sum(fl[jnp.arange(logits.shape[0]), target])


if __name__ == "__main__":
    # NOTE: 8x16 is a toy shape kept small for the check script; at this size
    # the call is pure fixed overhead.  Real use should batch many rows/call.
    N, C = 8, 16

    key = jax.random.PRNGKey(0)
    k_logits, k_target = jax.random.split(key)
    logits = jax.random.normal(k_logits, (N, C), dtype=jnp.float32)
    target = jax.random.randint(k_target, (N,), 0, C, dtype=jnp.int32)
    # Deterministic per-class weights (synthetic, shape [C]).
    weight = 0.5 + 0.05 * jnp.arange(C, dtype=jnp.float32)

    ok = True
    for gamma in (2.0, 0.0, 1.5):   # integer fast path, gamma==0 path, float pow path
        loss = jax.block_until_ready(focal_loss(logits, target, weight, gamma=gamma))
        ref = focal_loss_ref(logits, target, weight, gamma=gamma)
        ok = ok and bool(jnp.allclose(loss, ref, rtol=1e-5, atol=1e-5))
        assert ok, (gamma, loss, ref)

    print("KERNEL_OK")
</pallas_src>

<mosaic_0001>
module attributes {stable_mosaic.version = 11 : i64} {
  func.func @focal_loss_kernel(%arg0: i32, %arg1: memref<16x128xf32, #tpu.memory_space<vmem>>, %arg2: memref<1x128xi32, #tpu.memory_space<vmem>>, %arg3: memref<16x1xf32, #tpu.memory_space<vmem>>, %arg4: memref<8x128xf32, #tpu.memory_space<vmem>>) attributes {dimension_semantics = [#tpu.dimension_semantics<parallel>], iteration_bounds = array<i64: 1>, scalar_prefetch = 0 : i64, scratch_operands = 0 : i64, tpu.core_type = #tpu.core_type<tc>, window_params = [{transform_indices = @transform_0, window_bounds = array<i64: 16, 128>}, {transform_indices = @transform_1, window_bounds = array<i64: 1, 128>}, {pipeline_mode = #tpu.pipeline_mode<synchronous>, transform_indices = @transform_2, window_bounds = array<i64: 16, 1>}, {transform_indices = @transform_3, window_bounds = array<i64: 8, 128>}]} {
    %c0 = arith.constant 0 : index
    %c0_0 = arith.constant 0 : index
    %0 = vector.load %arg1[%c0, %c0_0] : memref<16x128xf32, #tpu.memory_space<vmem>>, vector<16x128xf32>
    %c0_1 = arith.constant 0 : index
    %c0_2 = arith.constant 0 : index
    %1 = vector.load %arg2[%c0_1, %c0_2] : memref<1x128xi32, #tpu.memory_space<vmem>>, vector<1x128xi32>
    %c0_3 = arith.constant 0 : index
    %c0_4 = arith.constant 0 : index
    %2 = vector.load %arg3[%c0_3, %c0_4] : memref<16x1xf32, #tpu.memory_space<vmem>>, vector<16x1xf32>
    %cst = arith.constant dense<0xFF800000> : vector<128xf32>
    %3 = vector.multi_reduction <maximumf>, %0, %cst [0] : vector<16x128xf32> to vector<128xf32>
    %4 = vector.shape_cast %3 : vector<128xf32> to vector<1x128xf32>
    %5 = vector.broadcast %4 : vector<1x128xf32> to vector<16x128xf32>
    %6 = arith.subf %0, %5 : vector<16x128xf32>
    %7 = math.exp %6 : vector<16x128xf32>
    %cst_5 = arith.constant dense<0.000000e+00> : vector<128xf32>
    %8 = vector.multi_reduction <add>, %7, %cst_5 [0] : vector<16x128xf32> to vector<128xf32>
    %9 = vector.shape_cast %8 : vector<128xf32> to vector<1x128xf32>
    %10 = tpu.iota {dimensions = array<i32: 0>} : vector<16x128xi32>
    %11 = vector.broadcast %1 : vector<1x128xi32> to vector<16x128xi32>
    %12 = arith.cmpi eq, %10, %11 : vector<16x128xi32>
    %cst_6 = arith.constant 0.000000e+00 : f32
    %13 = vector.broadcast %cst_6 : f32 to vector<16x128xf32>
    %14 = arith.select %12, %0, %13 : vector<16x128xi1>, vector<16x128xf32>
    %cst_7 = arith.constant dense<0.000000e+00> : vector<128xf32>
    %15 = vector.multi_reduction <add>, %14, %cst_7 [0] : vector<16x128xf32> to vector<128xf32>
    %16 = vector.shape_cast %15 : vector<128xf32> to vector<1x128xf32>
    %cst_8 = arith.constant 0.000000e+00 : f32
    %17 = vector.broadcast %cst_8 : f32 to vector<16x128xf32>
    %18 = arith.select %12, %7, %17 : vector<16x128xi1>, vector<16x128xf32>
    %cst_9 = arith.constant dense<0.000000e+00> : vector<128xf32>
    %19 = vector.multi_reduction <add>, %18, %cst_9 [0] : vector<16x128xf32> to vector<128xf32>
    %20 = vector.shape_cast %19 : vector<128xf32> to vector<1x128xf32>
    %cst_10 = arith.constant 0.000000e+00 : f32
    %21 = vector.shape_cast %2 : vector<16x1xf32> to vector<16x1xf32>
    %22 = vector.broadcast %21 : vector<16x1xf32> to vector<16x128xf32>
    %23 = vector.broadcast %cst_10 : f32 to vector<16x128xf32>
    %24 = arith.select %12, %22, %23 : vector<16x128xi1>, vector<16x128xf32>
    %cst_11 = arith.constant dense<0.000000e+00> : vector<128xf32>
    %25 = vector.multi_reduction <add>, %24, %cst_11 [0] : vector<16x128xf32> to vector<128xf32>
    %26 = vector.shape_cast %25 : vector<128xf32> to vector<1x128xf32>
    %27 = arith.divf %20, %9 : vector<1x128xf32>
    %28 = arith.subf %16, %4 : vector<1x128xf32>
    %29 = math.log %9 : vector<1x128xf32>
    %30 = arith.subf %28, %29 : vector<1x128xf32>
    %cst_12 = arith.constant 1.000000e+00 : f32
    %31 = vector.broadcast %cst_12 : f32 to vector<1x128xf32>
    %32 = arith.subf %31, %27 : vector<1x128xf32>
    %cst_13 = arith.constant 0.000000e+00 : f32
    %33 = vector.broadcast %cst_13 : f32 to vector<1x128xf32>
    %34 = arith.maximumf %32, %33 : vector<1x128xf32>
    %35 = arith.mulf %34, %34 : vector<1x128xf32>
    %cst_14 = arith.constant 0.000000e+00 : f32
    %36 = vector.broadcast %cst_14 : f32 to vector<1x128xf32>
    %37 = arith.subf %36, %35 : vector<1x128xf32>
    %38 = arith.mulf %26, %37 : vector<1x128xf32>
    %39 = arith.mulf %38, %30 : vector<1x128xf32>
    %40 = vector.shape_cast %39 : vector<1x128xf32> to vector<1x128xf32>
    %41 = vector.broadcast %40 : vector<1x128xf32> to vector<8x128xf32>
    %c0_15 = arith.constant 0 : index
    %c0_16 = arith.constant 0 : index
    %42 = vector.load %arg4[%c0_15, %c0_16] : memref<8x128xf32, #tpu.memory_space<vmem>>, vector<8x128xf32>
    tpu.vector_store %arg4[%c0_15, %c0_16], %41 {strides = array<i32>} : memref<8x128xf32, #tpu.memory_space<vmem>>, vector<8x128xf32>,
    return
  }
  func.func @transform_0(%arg0: i32) -> (i32, i32) {
    %c0_i32 = arith.constant 0 : i32
    %c0_i32_0 = arith.constant 0 : i32
    return %c0_i32, %arg0 : i32, i32
  }
  func.func @transform_1(%arg0: i32) -> (i32, i32) {
    %c0_i32 = arith.constant 0 : i32
    %c0_i32_0 = arith.constant 0 : i32
    return %c0_i32, %arg0 : i32, i32
  }
  func.func @transform_2(%arg0: i32) -> (i32, i32) {
    %c0_i32 = arith.constant 0 : i32
    %c0_i32_0 = arith.constant 0 : i32
    %c0_i32_1 = arith.constant 0 : i32
    return %c0_i32, %c0_i32_0 : i32, i32
  }
  func.func @transform_3(%arg0: i32) -> (i32, i32) {
    %c0_i32 = arith.constant 0 : i32
    %c0_i32_0 = arith.constant 0 : i32
    return %c0_i32, %arg0 : i32, i32
  }
}

</mosaic_0001>

<bundles_post_ra>
// kernel: tpu_custom_call.1
= control target key start
LH: loop header
LB: loop body
LE: loop exit
PB: predicated region body
PF: predicated region fallthrough
CT: control target
= control target key end

     0   :  { %v163_v1 = vmov 0   ;;  %s214_s0 = inlined_call_operand.vmem [shape: f32[16,128], index: 0, kind: input, shape index: {}]   ;;  %s215_s1 = inlined_call_operand.vmem [shape: s32[1,128], index: 1, kind: input, shape index: {}]   ;;  %s216_s2 = inlined_call_operand.vmem [shape: f32[16,1], index: 2, kind: input, shape index: {}]   ;;  %s217_s3 = inlined_call_operand.hbm [shape: f32[8,128], index: 3, kind: output, shape index: {}]  }
   0x1   :  { %v18_v0 = vld [vmem:[%s216_s2] sm:$0xff]  ;;  %127 = vset.pattern.permute.xlu0 %v163_v1 }
   0x2   :  { %8 = vsyncpa [#allocation3], 0  ;;  %66 = vperm.xlu0 %127, %v18_v0   ;;  %v19_v2 = vld [vmem:[%s216_s2 + $0x8] sm:$0xff]  ;;  %v15_v3 = vld [vmem:[%s214_s0] sm:$0xff]  ;;  %v40_v21 = vlaneseq  ;;  %s116_s23 = sshll.u32 %s217_s3, 4  ;;  %s117_s23 = int_to_ptr.hbm [resolvable:$true] %s116_s23 }
   0x3   :  { %v16_v4 = vld [vmem:[%s214_s0 + $0x8] sm:$0xff]  ;;  %v128_v26 = vld [vmem:[%s215_s1] ss:$0 sm:$0xff]  ;;  %s164_s1 = smov [#allocation2]  }
   0x4   :  { %v20_v5 = vmax.f32 %v15_v3, %v16_v4  ;;  %v41_v24 = vshrl.u32 %v40_v21, 7  ;;  %s114_s20 = sshll.u32 %s164_s1, 4  ;;  %s115_s20 = int_to_ptr.vmem [resolvable:$true] %s114_s20 }
   0x6   :  { %v21_v6 = vrot.slane %v20_v5, 4  ;;  %v42_v27 = vadd.s32 8, %v41_v24  ;;  %vm44_vm0 = vcmp.eq.s32.totalorder %v41_v24, %v128_v26 }
   0x7   :  { %v46_v37 = vsel %vm44_vm0, %v15_v3, 0.0 }
   0x8   :  { %v22_v7 = vmax.f32 %v20_v5, %v21_v6  ;;  %vm45_vm1 = vcmp.eq.s32.totalorder %v42_v27, %v128_v26 }
   0x9   :  { %v47_v38 = vsel %vm45_vm1, %v16_v4, 0.0 }
   0xa   :  { %71 = vperm.xlu0 %127, %v19_v2   ;;  %v23_v8 = vrot.slane %v22_v7, 2  ;;  %v48_v40 = vadd.f32 %v47_v38, %v46_v37 }
   0xc   :  { %v24_v9 = vmax.f32 %v22_v7, %v23_v8  ;;  %v49_v44 = vrot.slane %v48_v40, 4 }
   0xe   :  { %v25_v10 = vrot.slane %v24_v9, 1  ;;  %v50_v49 = vadd.f32 %v49_v44, %v48_v40 }
  0x10   :  { %v197_v11 = vmax.f32 %v24_v9, %v25_v10  ;;  %v51_v54 = vrot.slane %v50_v49, 2 }
  0x12   :  { %v27_v12 = vsub.f32 %v15_v3, %v197_v11  ;;  %v28_v13 = vsub.f32 %v16_v4, %v197_v11  ;;  %v52_v56 = vadd.f32 %v51_v54, %v50_v49 }
  0x14   :  { %v29_v14 = vmul.f32 1.442695, %v27_v12  ;;  %v31_v15 = vmul.f32 1.442695, %v28_v13  ;;  %v53_v62 = vrot.slane %v52_v56, 1 }
  0x16   :  { %129 = vpow2.f32 %v29_v14  ;;  %v54_v2 = vadd.f32 %v53_v62, %v52_v56 }
  0x17   :  { %131 = vpow2.f32 %v31_v15 }
  0x18   :  { %v98_v7 = vsub.f32 %v54_v2, %v197_v11 }
  0x1c   :  { %v130_v16 = vpop.eup %129 }
  0x1d   :  { %v132_v17 = vpop.eup %131  ;;  %v55_v29 = vsel %vm44_vm0, %v130_v16, 0.0 }
  0x1e   :  { %v33_v18 = vadd.f32 %v132_v17, %v130_v16  ;;  %v56_v30 = vsel %vm45_vm1, %v132_v17, 0.0 }
  0x1f   :  { %v57_v31 = vadd.f32 %v56_v30, %v55_v29 }
  0x20   :  { %v34_v19 = vrot.slane %v33_v18, 4 }
  0x21   :  { %v58_v33 = vrot.slane %v57_v31, 4 }
  0x22   :  { %v35_v20 = vadd.f32 %v34_v19, %v33_v18 }
  0x23   :  { %v59_v35 = vadd.f32 %v58_v33, %v57_v31 }
  0x24   :  { %v36_v22 = vrot.slane %v35_v20, 2 }
  0x25   :  { %v60_v39 = vrot.slane %v59_v35, 2 }
  0x26   :  { %v37_v23 = vadd.f32 %v36_v22, %v35_v20 }
  0x27   :  { %v61_v42 = vadd.f32 %v60_v39, %v59_v35 }
  0x28   :  { %v38_v25 = vrot.slane %v37_v23, 1 }
  0x29   :  { %v62_v47 = vrot.slane %v61_v42, 1 }
  0x2a   :  { %v39_v28 = vadd.f32 %v38_v25, %v37_v23 }
  0x2b   :  { %v63_v52 = vadd.f32 %v62_v47, %v61_v42 }
  0x2c   :  { %133 = vrcp.f32 %v39_v28  ;;  %vm88_vm2 = vweird.f32 %v39_v28  ;;  %v94_v43 = vand.u32 2147483648, %v39_v28  ;;  %v92_v46 = vand.u32 2147483647, %v39_v28 }
  0x2d   :  { %135 = vlog2.f32 %v39_v28 }
  0x2e   :  { %v95_v48 = vor.u32 1.1754944e-38, %v94_v43  ;;  %vm93_vm5 = vcmp.eq.f32.partialorder %v92_v46, 8.507059e+37 }
  0x32   :  { %v134_v32 = vpop.eup %133 }
  0x33   :  { %v84_v34 = vmul.f32 %v134_v32, %v39_v28  ;;  %vm89_vm3 = vweird.f32 %v134_v32  ;;  %v136_v3 = vpop.eup %135 }
  0x34   :  { %vm90_vm4 = vmor %vm88_vm2, %vm89_vm3  ;;  %v100_v8 = vmul.f32 0.6931472, %v136_v3 }
  0x35   :  { %v85_v36 = vsub.f32 1.0, %v84_v34 }
  0x36   :  { %v101_v13 = vsub.f32 %v98_v7, %v100_v8 }
  0x37   :  { %v86_v41 = vmul.f32 %v134_v32, %v85_v36 }
  0x39   :  { %v87_v45 = vadd.f32 %v134_v32, %v86_v41 }
  0x3b   :  { %v91_v50 = vsel %vm90_vm4, %v134_v32, %v87_v45 }
  0x3c   :  { %v96_v53 = vsel %vm93_vm5, %v95_v48, %v91_v50 }
  0x3d   :  { %v97_v55 = vmul.f32 %v96_v53, %v63_v52 }
  0x3f   :  { %v102_v58 = vsub.f32 1.0, %v97_v55 }
  0x41   :  { %v103_v0 = vmax.f32 %v102_v58, 0.0 }
  0x43   :  { %v104_v5 = vmul.f32 %v103_v0, %v103_v0 }
  0x45   :  { %v105_v10 = vsub.f32 0.0, %v104_v5 }
  0x74   :  { %v67_v51 = vpop.permute.xlu0 %66 }
  0x75   :  { %v74_v59 = vsel %vm44_vm0, %v67_v51, 0.0 }
  0x7c   :  { %v72_v57 = vpop.permute.xlu0 %71 }
  0x7d   :  { %v75_v60 = vsel %vm45_vm1, %v72_v57, 0.0 }
  0x7e   :  { %v76_v61 = vadd.f32 %v75_v60, %v74_v59 }
  0x80   :  { %v77_v63 = vrot.slane %v76_v61, 4 }
  0x82   :  { %v78_v1 = vadd.f32 %v77_v63, %v76_v61 }
  0x84   :  { %v79_v4 = vrot.slane %v78_v1, 2 }
  0x86   :  { %v80_v6 = vadd.f32 %v79_v4, %v78_v1 }
  0x88   :  { %v81_v9 = vrot.slane %v80_v6, 1 }
  0x8a   :  { %v82_v12 = vadd.f32 %v81_v9, %v80_v6 }
  0x8c   :  { %v106_v14 = vmul.f32 %v105_v10, %v82_v12 }
  0x8e   :  { %v107_v15 = vmul.f32 %v106_v14, %v101_v13 }
  0x90   :  { %108 = vst [vmem:[#allocation2] sm:$0xff] %v107_v15 }
  0x91   :  { %119 = dma.vmem_to_hbm [thread:$0]  %s115_s20, 128, %s117_s23, [#allocation3]  }
  0x92   :  { %161 = dma.done.wait [#allocation3], 128  }
  0x93   :  { %162 = vsyncadd [#allocation3], 4294967168 }
  0x94   :  { %124 = vsyncpa [#allocation3], 1 }

</bundles_post_ra>
